<compile_context>
chip_gen: v7x
topology: tpu7x:2x2x1
jax: 0.10.0
libtpu: 0.0.40
codegen_flags: <defaults>
</compile_context>

<pallas_src>
import functools

import jax
import jax.numpy as jnp
from jax.experimental import pallas as pl
from jax.experimental.pallas import tpu as pltpu

LANES = 128
SUBLANES = 8
MAX_TILE_ROWS = 1024   # ~85% of HBM roofline per measured tiled-elementwise data
N_PAR = 2              # leading parallel grid axis (both TCs on v7x; serial on v5e/v6e)


def _cdiv(a, b):
    return (a + b - 1) // b


def _focal_loss_kernel(pt_ref, tgt_ref, out_ref, acc_ref, *,
                       gamma, alpha, n_valid, tile_rows, rows_per_core, has_pad):
    c = pl.program_id(0)   # parallel (core) axis
    i = pl.program_id(1)   # reduction axis

    @pl.when(i == 0)
    def _init():
        acc_ref[...] = jnp.zeros_like(acc_ref)

    pt = pt_ref[...].astype(jnp.float32)
    tgt = tgt_ref[...].astype(jnp.float32)
    one_m_pt = 1.0 - pt

    # gamma is a static Python int -> integer_pow (VPU), not EUP pow().
    loss = ((-alpha) * (one_m_pt ** gamma) * tgt * jnp.log(pt)
            - (1.0 - alpha) * (pt ** gamma) * (1.0 - tgt) * jnp.log(one_m_pt))

    if has_pad:
        # Only tiles whose element range reaches past n_valid need masking.
        tile_base = (c * rows_per_core + i * tile_rows) * LANES
        needs_mask = tile_base + tile_rows * LANES > n_valid

        @pl.when(needs_mask)
        def _masked():
            row_idx = jax.lax.broadcasted_iota(jnp.int32, (tile_rows, LANES), 0)
            lane_idx = jax.lax.broadcasted_iota(jnp.int32, (tile_rows, LANES), 1)
            elem_idx = tile_base + row_idx * LANES + lane_idx
            acc_ref[...] += jnp.where(elem_idx < n_valid, loss, 0.0)

        @pl.when(jnp.logical_not(needs_mask))
        def _unmasked():
            acc_ref[...] += loss
    else:
        acc_ref[...] += loss

    @pl.when(i == pl.num_programs(1) - 1)
    def _finalize():
        # single cross-lane/sublane reduce per core, at the very end
        out_ref[...] = jnp.sum(acc_ref[...]).reshape(1, 1, 1)


def bce_focal_loss(pred, target, gamma=2, alpha=0.75,
                   reduction="elementwise_mean"):
    assert pred.shape == target.shape
    n_valid = pred.size

    # Native dtype, no wrapper-side up-cast (kernel casts to f32 internally).
    flat_p = pred.reshape(-1)
    flat_t = target.reshape(-1)

    rows_needed = _cdiv(n_valid, LANES)
    tile_rows = min(MAX_TILE_ROWS,
                    _cdiv(_cdiv(rows_needed, N_PAR), SUBLANES) * SUBLANES)
    steps = _cdiv(rows_needed, N_PAR * tile_rows)
    rows_per_core = steps * tile_rows
    padded_rows = N_PAR * rows_per_core
    pad = padded_rows * LANES - n_valid
    has_pad = pad > 0

    if has_pad:
        # Tail-only padding (pt=0.5 keeps log() finite; padded elements are
        # excluded in-kernel via jnp.where). Skipped entirely when aligned.
        flat_p = jnp.concatenate([flat_p, jnp.full((pad,), 0.5, flat_p.dtype)])
        flat_t = jnp.concatenate([flat_t, jnp.zeros((pad,), flat_t.dtype)])

    p2 = flat_p.reshape(padded_rows, LANES)
    t2 = flat_t.reshape(padded_rows, LANES)

    kernel = functools.partial(
        _focal_loss_kernel, gamma=gamma, alpha=alpha, n_valid=n_valid,
        tile_rows=tile_rows, rows_per_core=rows_per_core, has_pad=has_pad)

    in_map = lambda c, i: (c * steps + i, 0)

    partials = pl.pallas_call(
        kernel,
        out_shape=jax.ShapeDtypeStruct((N_PAR, 1, 1), jnp.float32),
        grid_spec=pltpu.PrefetchScalarGridSpec(
            num_scalar_prefetch=0,
            grid=(N_PAR, steps),
            in_specs=[
                pl.BlockSpec((tile_rows, LANES), in_map),
                pl.BlockSpec((tile_rows, LANES), in_map),
            ],
            out_specs=pl.BlockSpec((1, 1, 1), lambda c, i: (c, 0, 0)),
            scratch_shapes=[pltpu.VMEM((tile_rows, LANES), jnp.float32)],
        ),
        compiler_params=pltpu.CompilerParams(
            dimension_semantics=("parallel", "arbitrary")),
    )(p2, t2)

    total = jnp.sum(partials)
    if reduction == "elementwise_mean":
        return total / jnp.float32(n_valid)
    elif reduction == "sum":
        return total
    else:
        # TODO(synk): reduction='none' needs an elementwise-output kernel variant.
        raise NotImplementedError(
            "reduction='none' is not supported by this fused-reduction kernel")


def _reference(pred, target, gamma=2, alpha=0.75):
    pt = pred.astype(jnp.float32)
    t = target.astype(jnp.float32)
    loss = (-alpha * (1 - pt) ** gamma * t * jnp.log(pt)
            - (1 - alpha) * pt ** gamma * (1 - t) * jnp.log(1 - pt))
    return jnp.mean(loss)


if __name__ == "__main__":
    key = jax.random.PRNGKey(0)
    k1, k2, k3, k4 = jax.random.split(key, 4)

    # Case 1: aligned f32 NCHW probabilities (no padding path).
    x = jax.random.uniform(k1, (2, 4, 16, 16), jnp.float32,
                           minval=0.05, maxval=0.95)
    target = (jax.random.uniform(k2, (2, 4, 16, 16)) > 0.5).astype(jnp.float32)
    out = bce_focal_loss(x, target)
    jax.block_until_ready(out)
    ref = _reference(x, target)
    assert jnp.allclose(out, ref, rtol=1e-5, atol=1e-6), (out, ref)

    # Case 2: unaligned bf16 input (exercises native-dtype streaming + in-kernel mask).
    xb = jax.random.uniform(k3, (3, 5, 7, 11), jnp.bfloat16,
                            minval=0.05, maxval=0.95)
    tb = (jax.random.uniform(k4, (3, 5, 7, 11)) > 0.5).astype(jnp.bfloat16)
    out2 = bce_focal_loss(xb, tb)
    jax.block_until_ready(out2)
    ref2 = _reference(xb, tb)
    assert jnp.allclose(out2, ref2, rtol=1e-5, atol=1e-5), (out2, ref2)

    print("KERNEL_OK")
</pallas_src>

<mosaic_0001>
module attributes {stable_mosaic.version = 11 : i64} {
  func.func @_focal_loss_kernel(%arg0: i32, %arg1: i32, %arg2: memref<8x128xf32, #tpu.memory_space<vmem>>, %arg3: memref<8x128xf32, #tpu.memory_space<vmem>>, %arg4: memref<1x1x1xf32, #tpu.memory_space<vmem>>, %arg5: memref<8x128xf32, #tpu.memory_space<vmem>>) attributes {dimension_semantics = [#tpu.dimension_semantics<parallel>, #tpu.dimension_semantics<arbitrary>], iteration_bounds = array<i64: 2, 1>, scalar_prefetch = 0 : i64, scratch_operands = 1 : i64, tpu.core_type = #tpu.core_type<tc>, window_params = [{transform_indices = @transform_0, window_bounds = array<i64: 8, 128>}, {transform_indices = @transform_1, window_bounds = array<i64: 8, 128>}, {transform_indices = @transform_2, window_bounds = array<i64: 1, 1, 1>}]} {
    %c0_i32 = arith.constant 0 : i32
    %0 = arith.cmpi eq, %arg1, %c0_i32 : i32
    %1 = arith.extui %0 : i1 to i32
    %c0_i32_0 = arith.constant 0 : i32
    %2 = arith.cmpi ne, %1, %c0_i32_0 : i32
    scf.if %2 {
      %cst_13 = arith.constant 0.000000e+00 : f32
      %28 = vector.broadcast %cst_13 : f32 to vector<8x128xf32>
      %c0_14 = arith.constant 0 : index
      %c0_15 = arith.constant 0 : index
      %29 = vector.load %arg5[%c0_14, %c0_15] : memref<8x128xf32, #tpu.memory_space<vmem>>, vector<8x128xf32>
      tpu.vector_store %arg5[%c0_14, %c0_15], %28 {strides = array<i32>} : memref<8x128xf32, #tpu.memory_space<vmem>>, vector<8x128xf32>,
    } else {
    }
    %c0 = arith.constant 0 : index
    %c0_1 = arith.constant 0 : index
    %3 = vector.load %arg2[%c0, %c0_1] : memref<8x128xf32, #tpu.memory_space<vmem>>, vector<8x128xf32>
    %c0_2 = arith.constant 0 : index
    %c0_3 = arith.constant 0 : index
    %4 = vector.load %arg3[%c0_2, %c0_3] : memref<8x128xf32, #tpu.memory_space<vmem>>, vector<8x128xf32>
    %cst = arith.constant 1.000000e+00 : f32
    %5 = vector.broadcast %cst : f32 to vector<8x128xf32>
    %6 = arith.subf %5, %3 : vector<8x128xf32>
    %7 = arith.mulf %6, %6 : vector<8x128xf32>
    %cst_4 = arith.constant -7.500000e-01 : f32
    %8 = vector.broadcast %cst_4 : f32 to vector<8x128xf32>
    %9 = arith.mulf %8, %7 : vector<8x128xf32>
    %10 = arith.mulf %9, %4 : vector<8x128xf32>
    %11 = math.log %3 : vector<8x128xf32>
    %12 = arith.mulf %10, %11 : vector<8x128xf32>
    %13 = arith.mulf %3, %3 : vector<8x128xf32>
    %cst_5 = arith.constant 2.500000e-01 : f32
    %14 = vector.broadcast %cst_5 : f32 to vector<8x128xf32>
    %15 = arith.mulf %14, %13 : vector<8x128xf32>
    %cst_6 = arith.constant 1.000000e+00 : f32
    %16 = vector.broadcast %cst_6 : f32 to vector<8x128xf32>
    %17 = arith.subf %16, %4 : vector<8x128xf32>
    %18 = arith.mulf %15, %17 : vector<8x128xf32>
    %19 = math.log %6 : vector<8x128xf32>
    %20 = arith.mulf %18, %19 : vector<8x128xf32>
    %21 = arith.subf %12, %20 : vector<8x128xf32>
    %c0_7 = arith.constant 0 : index
    %c0_8 = arith.constant 0 : index
    %22 = vector.load %arg5[%c0_7, %c0_8] : memref<8x128xf32, #tpu.memory_space<vmem>>, vector<8x128xf32>
    %23 = arith.addf %22, %21 : vector<8x128xf32>
    %c0_9 = arith.constant 0 : index
    %c0_10 = arith.constant 0 : index
    %24 = vector.load %arg5[%c0_9, %c0_10] : memref<8x128xf32, #tpu.memory_space<vmem>>, vector<8x128xf32>
    tpu.vector_store %arg5[%c0_9, %c0_10], %23 {strides = array<i32>} : memref<8x128xf32, #tpu.memory_space<vmem>>, vector<8x128xf32>,
    %c0_i32_11 = arith.constant 0 : i32
    %25 = arith.cmpi eq, %arg1, %c0_i32_11 : i32
    %26 = arith.extui %25 : i1 to i32
    %c0_i32_12 = arith.constant 0 : i32
    %27 = arith.cmpi ne, %26, %c0_i32_12 : i32
    scf.if %27 {
      %c0_13 = arith.constant 0 : index
      %c0_14 = arith.constant 0 : index
      %28 = vector.load %arg5[%c0_13, %c0_14] : memref<8x128xf32, #tpu.memory_space<vmem>>, vector<8x128xf32>
      %29 = vector.shape_cast %28 : vector<8x128xf32> to vector<1x8x128xf32>
      %cst_15 = arith.constant dense<0.000000e+00> : vector<1xf32>
      %30 = vector.multi_reduction <add>, %29, %cst_15 [1, 2] : vector<1x8x128xf32> to vector<1xf32>
      %31 = vector.shape_cast %30 : vector<1xf32> to vector<1x1x1xf32>
      %32 = vector.extract %31[0, 0, 0] : f32 from vector<1x1x1xf32>
      %33 = vector.broadcast %32 : f32 to vector<1x1x1xf32>
      %c0_16 = arith.constant 0 : index
      %c0_17 = arith.constant 0 : index
      %c0_18 = arith.constant 0 : index
      %34 = vector.load %arg4[%c0_16, %c0_17, %c0_18] : memref<1x1x1xf32, #tpu.memory_space<vmem>>, vector<1x1x1xf32>
      tpu.vector_store %arg4[%c0_16, %c0_17, %c0_18], %33 {strides = array<i32>} : memref<1x1x1xf32, #tpu.memory_space<vmem>>, vector<1x1x1xf32>,
    } else {
    }
    return
  }
  func.func @transform_0(%arg0: i32, %arg1: i32) -> (i32, i32) {
    %c1_i32 = arith.constant 1 : i32
    %0 = arith.muli %arg0, %c1_i32 : i32
    %1 = arith.addi %0, %arg1 : i32
    %c0_i32 = arith.constant 0 : i32
    %c0_i32_0 = arith.constant 0 : i32
    return %1, %c0_i32 : i32, i32
  }
  func.func @transform_1(%arg0: i32, %arg1: i32) -> (i32, i32) {
    %c1_i32 = arith.constant 1 : i32
    %0 = arith.muli %arg0, %c1_i32 : i32
    %1 = arith.addi %0, %arg1 : i32
    %c0_i32 = arith.constant 0 : i32
    %c0_i32_0 = arith.constant 0 : i32
    return %1, %c0_i32 : i32, i32
  }
  func.func @transform_2(%arg0: i32, %arg1: i32) -> (i32, i32, i32) {
    %c0_i32 = arith.constant 0 : i32
    %c0_i32_0 = arith.constant 0 : i32
    %c0_i32_1 = arith.constant 0 : i32
    return %arg0, %c0_i32, %c0_i32_0 : i32, i32, i32
  }
}

</mosaic_0001>

<bundles_post_ra>
// kernel: tpu_custom_call.1
= control target key start
LH: loop header
LB: loop body
LE: loop exit
PB: predicated region body
PF: predicated region fallthrough
CT: control target
= control target key end

     0   :  { %7 = vsyncpa [#allocation4], 0  ;;  %s731_s0 = inlined_call_operand.hbm [shape: f32[16,128], index: 0, kind: input, shape index: {}]   ;;  %s732_s1 = inlined_call_operand.hbm [shape: f32[16,128], index: 1, kind: input, shape index: {}]   ;;  %s733_s2 = inlined_call_operand.vmem [shape: f32[2,1,1], index: 2, kind: output, shape index: {}]  }
   0x1   :  { %9 = vsyncpa [#allocation4 + $0x1], 0 }
   0x2   :  { %10 = vsyncpa [#allocation6], 0 }
   0x3   :  { %12 = vsyncpa [#allocation6 + $0x1], 0  ;;  %s559_s9 = smov 0   ;;  %s561_s10 = smov 0  }
   0x4   :  { %s563_s11 = smov 0   ;;  %s565_s12 = smov 0  }
   0x5   :  { %s567_s13 = smov 0   ;;  %s569_s14 = smov 0  }
   0x6 LB: > { %s347_s15 = sadd.s32 4294967295, %s540_s14   ;;  %s30_s16 = sadd.s32 1, %s536_s13  ;;  %s540_s14 = sphi %s569_s14, %s18_s14   ;;  %s536_s13 = sphi %s567_s13, %s747_s13   ;;  %s532_s12 = sphi %s565_s12, %s746_s12   ;;  %s528_s11 = sphi %s563_s11, %s745_s11   ;;  %s524_s10 = sphi %s561_s10, %s744_s10   ;;  %s520_s9 = sphi %s559_s9, %s743_s9  }
   0x7   : > { %p32_p0 = scmp.ge.s32.totalorder %s30_s16, 2  ;;  %s39_s17 = sadd.s32 1, %s528_s11 }
   0x8   : > { %p46_p1 = scmp.ne.s32.totalorder %s528_s11, %s524_s10  ;;  %p47_p2 = scmp.eq.s32.totalorder %s540_s14, 0 }
   0x9   : > { %s749_s16 = smov (%p32_p0, %s30_s16), 0  ;;  %p52_p4 = scmp.ne.s32.totalorder %s524_s10, %s520_s9 }
   0xa   : > { %p595_p3 = por %p47_p2, %p46_p1  ;;  %s36_s19 = ssub.s32 %s536_s13, %s749_s16 }
   0xb   : > { %p53_p5 = scmp.eq.s32.totalorder %s347_s15, 0  ;;  %p37_p6 = scmp.eq.s32.totalorder %s36_s19, 0 }
   0xc   : > { %p373_p8 = scmp.lt.s32.totalorder %s540_s14, 2  ;;  %s611_s22 = sand.u32 1, %s528_s11  }
   0xd   : > { %p602_p7 = por %p53_p5, %p52_p4  ;;  %s352_s23 = sshll.u32 %s536_s13, 7 }
   0xe   : > { %s608_s21 = scalar_select %p37_p6, %s528_s11, %s39_s17  }
   0xf   : > { %s736_s20 = scalar_select %p602_p7, 1, 0 }
  0x10   : > { %s351_s24 = sshll.u32 %s611_s22, 3  ;;  %s620_s27 = scalar_lea.hbm %s731_s0, %s352_s23 }
  0x11   : > { %s134_s28 = scalar_lea.vmem [#allocation3], %s351_s24  ;;  %p626_p9 = pnand %p373_p8, %p595_p3 }
  0x12   : > { %s142_s29 = sshll.u32 %s134_s28, 4  ;;  %s131_s3 = scalar_lea.sflag [#allocation4], %s611_s22  ;;  %s630_s29 = int_to_ptr.vmem [resolvable:$true] %s142_s29 }
  0x13   : > { %s426_s4 = scalar_lea.hbm %s620_s27, 128  ;;  %p428_p13 = pneg %p626_p9 }
  0x14   : > { %p427_p12 = scmp.ne.s32.totalorder %s620_s27, %s426_s4  ;;  %s431_s7 = scalar_lea.hbm %s731_s0, 256 }
  0x15   : > { %p432_p2 = scmp.lt.u32.totalorder %s620_s27, %s731_s0  ;;  %p433_p3 = scmp.lt.u32.totalorder %s431_s7, %s426_s4 }
  0x16   : > { %p429_p0 = pnand %p428_p13, %p427_p12  ;;  %p435_p5 = scmp.lt.u32.totalorder %s426_s4, %s620_s27 }
  0x17   : > { %p434_p4 = por %p433_p3, %p432_p2 }
  0x18   : > { %p430_p1 = pneg %p429_p0 }
  0x19   : > { %p436_p6 = por %p435_p5, %p434_p4 }
  0x1b   : > { %p437_p8 = pnand %p436_p6, %p430_p1 }
  0x1d   : > { %440 = shalt.err (!%p437_p8)
}
  0x1e   : > { %s441_s15 = scalar_lea.vmem %s630_s29, 128  ;;  %s542_s17 = smov [#allocation3]  }
  0x1f   : > { %p442_p12 = scmp.ne.s32.totalorder %s630_s29, %s441_s15  ;;  %s446_s18 = sshll.u32 %s542_s17, 4  ;;  %s447_s18 = int_to_ptr.vmem [resolvable:$false] %s446_s18 }
  0x20   : > { %s448_s19 = scalar_lea.vmem %s447_s18, 256  ;;  %p449_p11 = scmp.lt.s32.totalorder %s630_s29, %s447_s18 }
  0x21   : > { %p444_p0 = pnand %p442_p12, %p428_p13  ;;  %p450_p2 = scmp.lt.s32.totalorder %s448_s19, %s441_s15 }
  0x23   : > { %p445_p10 = pneg %p444_p0  ;;  %p451_p3 = por %p450_p2, %p449_p11 }
  0x25   : > { %p452_p4 = pnand %p451_p3, %p445_p10 }
  0x27   : > { %455 = shalt.err (!%p452_p4)
}
  0x28   : > { %369 = dma.hbm_to_vmem [thread:$0]  (!%p626_p9), %s620_s27, 128, %s630_s29, %s131_s3  }
  0x29   : > { %p738_p1 = scmp.lt.s32.totalorder %s540_s14, 3  ;;  %p739_p5 = scmp.ge.s32.totalorder %s540_s14, 1 }
  0x2a   : > { %s673_s4 = scalar_lea.hbm %s732_s1, %s352_s23  ;;  %s153_s5 = scalar_lea.vmem [#allocation5], %s351_s24 }
  0x2b   : > { %p664_p6 = pnand %p739_p5, %p738_p1  ;;  %s161_s6 = sshll.u32 %s153_s5, 4  ;;  %s162_s6 = int_to_ptr.vmem [resolvable:$true] %s161_s6 }
  0x2c   : > { %s150_s27 = scalar_lea.sflag [#allocation6], %s611_s22  ;;  %s456_s29 = scalar_lea.hbm %s673_s4, 128 }
  0x2d   : > { %s740_s25 = scalar_select %p664_p6, 1, 0 }
  0x2e   : > { %p457_p10 = scmp.ne.s32.totalorder %s673_s4, %s456_s29  ;;  %s461_s23 = scalar_lea.hbm %s732_s1, 256 }
  0x2f   : > { %p462_p12 = scmp.lt.u32.totalorder %s673_s4, %s732_s1  ;;  %p463_p0 = scmp.lt.u32.totalorder %s461_s23, %s456_s29 }
  0x30   : > { %p459_p11 = pnand %p457_p10, %p428_p13  ;;  %p465_p3 = scmp.lt.u32.totalorder %s456_s29, %s673_s4 }
  0x31   : > { %p464_p2 = por %p463_p0, %p462_p12 }
  0x32   : > { %p460_p8 = pneg %p459_p11 }
  0x33   : > { %p466_p4 = por %p465_p3, %p464_p2 }
  0x35   : > { %p467_p1 = pnand %p466_p4, %p460_p8 }
  0x37   : > { %470 = shalt.err (!%p467_p1)
}
  0x38   : > { %s471_s22 = scalar_lea.vmem %s162_s6, 128  ;;  %s543_s24 = smov [#allocation5]  }
  0x39   : > { %p472_p5 = scmp.ne.s32.totalorder %s162_s6, %s471_s22  ;;  %s476_s15 = sshll.u32 %s543_s24, 4  ;;  %s477_s15 = int_to_ptr.vmem [resolvable:$false] %s476_s15 }
  0x3a   : > { %s478_s17 = scalar_lea.vmem %s477_s15, 256  ;;  %p479_p7 = scmp.lt.s32.totalorder %s162_s6, %s477_s15 }
  0x3b   : > { %p474_p10 = pnand %p472_p5, %p428_p13  ;;  %p480_p6 = scmp.lt.s32.totalorder %s478_s17, %s471_s22 }
  0x3d   : > { %p475_p11 = pneg %p474_p10  ;;  %p481_p0 = por %p480_p6, %p479_p7 }
  0x3f   : > { %p482_p12 = pnand %p481_p0, %p475_p11 }
  0x41   : > { %485 = shalt.err (!%p482_p12)
}
  0x42   : > { %372 = dma.hbm_to_vmem [thread:$0]  (!%p626_p9), %s673_s4, 128, %s162_s6, %s150_s27  }
  0x43   : > { %p741_p8 = scmp.ne.s32.totalorder %s740_s25, 0 }
  0x44   : > { %s172_s18 = sand.u32 (!%p741_p8), 1, %s524_s10   ;;  %p742_p13 = scmp.ne.s32.totalorder (!%p741_p8), %s736_s20, 0 }
  0x45   : > { %170 = sbr.rel (%p741_p8) target bundleno = 305 (0x131), region = 28  ;;  %s356_s19 = sshll.u32 (!%p741_p8), %s172_s18, 3 }
  0x46   : > { %s173_s26 = scalar_lea.sflag (!%p741_p8), [#allocation4], %s172_s18  ;;  %s176_s28 = scalar_lea.vmem (!%p741_p8), [#allocation3], %s356_s19 }
  0x4c   : > { %511 = dma.done.wait (%p742_p13), %s173_s26, 128  }
  0x4d   : > { %513 = vsyncadd (%p742_p13), %s173_s26, 4294967168  ;;  %s182_s5 = scalar_lea.sflag [#allocation6], %s172_s18  ;;  %s185_s29 = scalar_lea.vmem [#allocation5], %s356_s19 }
  0x4e   : > { %515 = dma.done.wait (%p742_p13), %s182_s5, 128  }
  0x4f   : > { %517 = vsyncadd (%p742_p13), %s182_s5, 4294967168  ;;  %v219_v0 = vld [vmem:[%s176_s28] sm:$0xff]  ;;  %v220_v4 = vld [vmem:[%s185_s29] sm:$0xff]  ;;  %p211_p7 = scmp.lt.s32.totalorder %s532_s12, 1  ;;  %vm253_vm0 = vcmask 0  }
  0x50   : > { %v221_v1 = vsub.f32 1.0, %v219_v0  ;;  %422 = vlog2.f32 %v219_v0  ;;  %v228_v3 = vmul.f32 %v219_v0, %v219_v0  ;;  %v230_v7 = vsub.f32 1.0, %v220_v4 }
  0x51   : > { %s751_s12 = smov (!%p211_p7, %s532_s12), 1 }
  0x52   : > { %v222_v2 = vmul.f32 %v221_v1, %v221_v1  ;;  %424 = vlog2.f32 %v221_v1  ;;  %v229_v6 = vmul.f32 0.25, %v228_v3  ;;  %s213_s25 = scalar_lea.vmem %s733_s2, %s751_s12 }
  0x54   : > { %v223_v5 = vmul.f32 -0.75, %v222_v2  ;;  %v231_v11 = vmul.f32 %v230_v7, %v229_v6 }
  0x56   : > { %v224_v8 = vmul.f32 %v223_v5, %v220_v4 }
  0x5a   : > { %v423_v9 = vpop.eup %422 }
  0x5b   : > { %v226_v10 = vmul.f32 0.6931472, %v423_v9 }
  0x5c   : > { %v425_v12 = vpop.eup %424 }
  0x5d   : > { %v227_v13 = vmul.f32 %v226_v10, %v224_v8  ;;  %v233_v14 = vmul.f32 0.6931472, %v425_v12 }
  0x5f   : > { %v234_v15 = vmul.f32 %v233_v14, %v231_v11 }
  0x61   : > { %v235_v16 = vsub.f32 %v227_v13, %v234_v15 }
  0x63   : > { %243 = vadd.xlane.f32.xlu0 %v235_v16 }
  0xf0   : > { %v244_v17 = vpop.xlane.xlu0 %243 }
  0xf1   : > { %v245_v18 = vrot.slane %v244_v17, 4 }
  0xf3   : > { %v246_v19 = vadd.f32 %v245_v18, %v244_v17 }
  0xf5   : > { %v247_v20 = vrot.slane %v246_v19, 2 }
  0xf7   : > { %v248_v21 = vadd.f32 %v247_v20, %v246_v19 }
  0xf9   : > { %v249_v22 = vrot.slane %v248_v21, 1 }
  0xfb   : > { %v250_v23 = vadd.f32 %v249_v22, %v248_v21 }
  0xfd   : > { %360 = vpush %v250_v23 }
 0x12e   : > { %s361_s4 = spop %360 }
 0x12f   : > { %v252_v24 = vstv %s361_s4 }
 0x130   : > { %254 = vst.msk [vmem:[%s213_s25] sm:$0x1] %vm253_vm0, %v252_v24 }
 0x131 PF: > { %s18_s14 = sadd.s32 1, %s540_s14   ;;  %s743_s9 = smov %s524_s10 }
 0x132   : > { %p15_p9 = scmp.ge.s32.totalorder %s18_s14, 4   ;;  %s744_s10 = smov %s528_s11 }
 0x133   : > { %s745_s11 = smov %s608_s21  ;;  %s746_s12 = smov %s536_s13 }
 0x134   : > { %s747_s13 = smov %s749_s16  ;;  %17 = sbr.rel (!%p15_p9) target bundleno = 6 (0x6), region = 89 }
 0x13b   :  { %272 = vsyncpa [#allocation4], 1 }
 0x13c   :  { %274 = vsyncpa [#allocation4 + $0x1], 1 }
 0x13d   :  { %275 = vsyncpa [#allocation6], 1 }
 0x13e   :  { %277 = vsyncpa [#allocation6 + $0x1], 1 }

</bundles_post_ra>
